<compile_context>
chip_gen: v7x
topology: tpu7x:2x2x1
jax: 0.10.0
libtpu: 0.0.40
codegen_flags: <defaults>
</compile_context>

<pallas_src>
import functools
import math

import jax
import jax.numpy as jnp
from jax import lax
from jax.experimental import pallas as pl
from jax.experimental.pallas import tpu as pltpu


_LANES = 512                          # preferred lane-dense width when folding big last dims
_DEFAULT_BLOCK_BYTES = 4 * 1024 * 1024  # 4 MiB / input tile: amortizes ~0.35 us/step overhead
_MIN_PALLAS_ELEMS = 16384             # below this, fused XLA elementwise+reduce wins


def _cdiv(a, b):
    return -(-a // b)


def _round_up(a, b):
    return _cdiv(a, b) * b


def _has_two_tensorcores():
    """True on megacore / dual-TensorCore parts (v4, v5p, v7x)."""
    try:
        kind = jax.devices()[0].device_kind.lower()
    except Exception:
        return False
    return any(tag in kind for tag in ("v4", "v5p", "v7", "tpu7", "7x"))


def _reference(pred, target, max_score):
    s = jax.nn.sigmoid(pred.astype(jnp.float32)) * jnp.float32(max_score)
    return jnp.mean(jnp.abs(s - target.astype(jnp.float32)))


def _kimore_mae_kernel(pred_ref, target_ref, out_ref, acc_ref, *,
                       max_score, rows, block_rows, steps, ragged):
    c = pl.program_id(0)   # TensorCore shard ("parallel")
    i = pl.program_id(1)   # reduction axis ("arbitrary")

    @pl.when(i == 0)
    def _():
        acc_ref[...] = jnp.zeros_like(acc_ref)

    p = pred_ref[...].astype(jnp.float32)     # f32 math (v5e has no bf16 VPU/EUP)
    t = target_ref[...].astype(jnp.float32)

    # sigmoid(p) * max_score with exactly one EUP exp per element.
    s = pl.reciprocal(1.0 + jnp.exp(-p), approx=False) * jnp.float32(max_score)
    d = jnp.abs(s - t)

    if ragged:
        # Zero rows past the true extent (ragged last tile / clamped surplus tile).
        row0 = (c * steps + i) * block_rows
        ridx = row0 + lax.broadcasted_iota(jnp.int32, (d.shape[0], 1), 0)
        d = jnp.where(ridx < rows, d, 0.0)

    # In-register tile reduction: (block_rows, C) -> (g, 8, C) -> sum over g.
    # Pure VPU vreg adds; accumulator stays (8, C) instead of a full tile.
    g = d.shape[0] // 8
    acc_ref[...] += jnp.sum(d.reshape(g, 8, d.shape[1]), axis=0)

    @pl.when(i == pl.num_programs(1) - 1)
    def _():
        out_ref[...] = acc_ref[...]


def kimore_loss_mae(pred, target, *, max_score=50,
                    block_bytes=_DEFAULT_BLOCK_BYTES,
                    min_pallas_elems=_MIN_PALLAS_ELEMS):
    """mean(|sigmoid(pred) * max_score - target|) over all elements."""
    assert pred.shape == target.shape
    n_elems = math.prod(pred.shape)

    # Tiny / degenerate inputs: fused XLA elementwise+reduce beats a kernel launch.
    if n_elems < min_pallas_elems or pred.ndim == 0:
        return _reference(pred, target, max_score)

    # Collapse to a 2-D (rows, cols) view.  Only merges/splits contiguous row-major
    # dims, so these reshapes are metadata-only (no HBM copy, unlike jnp.pad).
    if pred.ndim == 1:
        rows, cols = 1, n_elems
    else:
        cols = pred.shape[-1]
        rows = n_elems // cols
    if cols >= 2 * _LANES and cols % _LANES == 0:
        rows, cols = rows * (cols // _LANES), _LANES   # fold to a lane-dense 512 slab

    itemsize = jnp.dtype(pred.dtype).itemsize
    row_bytes = cols * itemsize
    if 8 * row_bytes > block_bytes:
        # Even a minimal (8, cols) tile blows the VMEM budget.
        # TODO(synk): tile the lane dimension for huge, non-512-divisible last dims.
        return _reference(pred, target, max_score)

    p2 = pred.reshape(rows, cols)
    t2 = target.reshape(rows, cols)

    block_rows = min(max(8, (block_bytes // row_bytes) // 8 * 8), _round_up(rows, 8))
    total_tiles = _cdiv(rows, block_rows)
    num_shards = 2 if (_has_two_tensorcores() and total_tiles >= 2) else 1
    steps = _cdiv(total_tiles, num_shards)
    ragged = (num_shards * steps * block_rows) != rows
    last_block = total_tiles - 1

    if num_shards * steps > total_tiles:
        # Keep every DMA in bounds: the surplus step re-reads the last valid tile;
        # its contribution is zeroed by the in-kernel row mask.
        def in_idx(c, i):
            return (jnp.minimum(c * steps + i, last_block), 0)
    else:
        def in_idx(c, i):
            return (c * steps + i, 0)

    kernel = functools.partial(
        _kimore_mae_kernel,
        max_score=max_score, rows=rows, block_rows=block_rows,
        steps=steps, ragged=ragged)

    tile_bytes = block_rows * row_bytes
    # 2 inputs x 2 pipeline buffers x tile + (8, cols) acc + tiny out + margin.
    vmem_limit = int(min(4 * tile_bytes + (8 << 20), 48 << 20))

    cost = pl.CostEstimate(
        flops=6 * n_elems,
        transcendentals=n_elems,
        bytes_accessed=2 * n_elems * itemsize + num_shards * 8 * cols * 4,
    )

    partials = pl.pallas_call(
        kernel,
        out_shape=jax.ShapeDtypeStruct((num_shards * 8, cols), jnp.float32),
        grid_spec=pltpu.PrefetchScalarGridSpec(
            num_scalar_prefetch=0,
            grid=(num_shards, steps),
            in_specs=[
                pl.BlockSpec((block_rows, cols), in_idx),
                pl.BlockSpec((block_rows, cols), in_idx),
            ],
            out_specs=pl.BlockSpec((8, cols), lambda c, i: (c, 0)),
            scratch_shapes=[pltpu.VMEM((8, cols), jnp.float32)],
        ),
        compiler_params=pltpu.CompilerParams(
            dimension_semantics=("parallel", "arbitrary"),
            vmem_limit_bytes=vmem_limit,
        ),
        cost_estimate=cost,
    )(p2, t2)

    return jnp.sum(partials, dtype=jnp.float32) / jnp.float32(n_elems)


if __name__ == "__main__":
    key = jax.random.PRNGKey(0)
    ks = jax.random.split(key, 8)
    MAX_SCORE = 50

    def check(pred, targ, **kw):
        loss = jax.block_until_ready(
            kimore_loss_mae(pred, targ, max_score=MAX_SCORE, **kw))
        ref = jnp.mean(jnp.abs(
            jax.nn.sigmoid(pred.astype(jnp.float32)) * MAX_SCORE
            - targ.astype(jnp.float32)))
        assert jnp.allclose(loss, ref, rtol=1e-4, atol=1e-4), (loss, ref)

    # 1) Kimore-sized tiny input -> pure-JAX fast path (no kernel launch).
    pred = jax.random.normal(ks[0], (16, 128), dtype=jnp.float32)
    targ = jax.random.uniform(ks[1], (16, 128), minval=0.0, maxval=50.0,
                              dtype=jnp.float32)
    check(pred, targ)

    # 2) Pallas path: ragged rows (275 not a multiple of 8), non-128-multiple lanes.
    pred = jax.random.normal(ks[2], (275, 130), dtype=jnp.float32)
    targ = jax.random.uniform(ks[3], (275, 130), minval=0.0, maxval=50.0,
                              dtype=jnp.float32)
    check(pred, targ)

    # 3) Pallas path with small tiles: multi-step reduction, 2-shard split on
    #    dual-TensorCore parts, odd tile count -> clamped surplus-tile path.
    pred = jax.random.normal(ks[4], (560, 256), dtype=jnp.float32)
    targ = jax.random.uniform(ks[5], (560, 256), minval=0.0, maxval=50.0,
                              dtype=jnp.float32)
    check(pred, targ, block_bytes=64 * 1024)

    # 4) Default big-tile path: 3-D input folded (free reshape) to a 512-wide slab.
    pred = jax.random.normal(ks[6], (8, 512, 1024), dtype=jnp.float32)
    targ = jax.random.uniform(ks[7], (8, 512, 1024), minval=0.0, maxval=50.0,
                              dtype=jnp.float32)
    check(pred, targ)

    print("KERNEL_OK")
</pallas_src>

<mosaic_0001>
module attributes {stable_mosaic.version = 11 : i64} {
  func.func @_kimore_mae_kernel(%arg0: i32, %arg1: i32, %arg2: memref<280x130xf32, #tpu.memory_space<vmem>>, %arg3: memref<280x130xf32, #tpu.memory_space<vmem>>, %arg4: memref<8x130xf32, #tpu.memory_space<vmem>>, %arg5: memref<8x130xf32, #tpu.memory_space<vmem>>) attributes {dimension_semantics = [#tpu.dimension_semantics<parallel>, #tpu.dimension_semantics<arbitrary>], iteration_bounds = array<i64: 1, 1>, scalar_prefetch = 0 : i64, scratch_operands = 1 : i64, tpu.core_type = #tpu.core_type<tc>, window_params = [{transform_indices = @transform_0, window_bounds = array<i64: 280, 130>}, {transform_indices = @transform_1, window_bounds = array<i64: 280, 130>}, {transform_indices = @transform_2, window_bounds = array<i64: 8, 130>}]} {
    %c0_i32 = arith.constant 0 : i32
    %0 = arith.cmpi eq, %arg1, %c0_i32 : i32
    %1 = arith.extui %0 : i1 to i32
    %c0_i32_0 = arith.constant 0 : i32
    %2 = arith.cmpi ne, %1, %c0_i32_0 : i32
    scf.if %2 {
      %cst_14 = arith.constant 0.000000e+00 : f32
      %35 = vector.broadcast %cst_14 : f32 to vector<8x130xf32>
      %c0_15 = arith.constant 0 : index
      %c0_16 = arith.constant 0 : index
      %36 = vector.load %arg5[%c0_15, %c0_16] : memref<8x130xf32, #tpu.memory_space<vmem>>, vector<8x130xf32>
      tpu.vector_store %arg5[%c0_15, %c0_16], %35 {strides = array<i32>} : memref<8x130xf32, #tpu.memory_space<vmem>>, vector<8x130xf32>,
    } else {
    }
    %c0 = arith.constant 0 : index
    %c0_1 = arith.constant 0 : index
    %3 = vector.load %arg2[%c0, %c0_1] : memref<280x130xf32, #tpu.memory_space<vmem>>, vector<280x130xf32>
    %c0_2 = arith.constant 0 : index
    %c0_3 = arith.constant 0 : index
    %4 = vector.load %arg3[%c0_2, %c0_3] : memref<280x130xf32, #tpu.memory_space<vmem>>, vector<280x130xf32>
    %cst = arith.constant 0.000000e+00 : f32
    %5 = vector.broadcast %cst : f32 to vector<280x130xf32>
    %6 = arith.subf %5, %3 : vector<280x130xf32>
    %7 = math.exp %6 : vector<280x130xf32>
    %cst_4 = arith.constant 1.000000e+00 : f32
    %8 = vector.broadcast %cst_4 : f32 to vector<280x130xf32>
    %9 = arith.addf %8, %7 : vector<280x130xf32>
    %10 = tpu.reciprocal %9 : vector<280x130xf32> -> vector<280x130xf32>
    %cst_5 = arith.constant 5.000000e+01 : f32
    %11 = vector.broadcast %cst_5 : f32 to vector<280x130xf32>
    %12 = arith.mulf %10, %11 : vector<280x130xf32>
    %13 = arith.subf %12, %4 : vector<280x130xf32>
    %14 = math.absf %13 : vector<280x130xf32>
    %c1_i32 = arith.constant 1 : i32
    %15 = arith.muli %arg0, %c1_i32 : i32
    %16 = arith.addi %15, %arg1 : i32
    %c280_i32 = arith.constant 280 : i32
    %17 = arith.muli %16, %c280_i32 : i32
    %18 = tpu.iota {dimensions = array<i32: 0>} : vector<280x1xi32>
    %19 = vector.broadcast %17 : i32 to vector<280x1xi32>
    %20 = arith.addi %19, %18 : vector<280x1xi32>
    %c275_i32 = arith.constant 275 : i32
    %21 = vector.broadcast %c275_i32 : i32 to vector<280x1xi32>
    %22 = arith.cmpi slt, %20, %21 : vector<280x1xi32>
    %cst_6 = arith.constant 0.000000e+00 : f32
    %23 = vector.shape_cast %22 : vector<280x1xi1> to vector<280x1xi1>
    %24 = vector.broadcast %23 : vector<280x1xi1> to vector<280x130xi1>
    %25 = vector.broadcast %cst_6 : f32 to vector<280x130xf32>
    %26 = arith.select %24, %14, %25 : vector<280x130xi1>, vector<280x130xf32>
    %c0_7 = arith.constant 0 : index
    %c0_8 = arith.constant 0 : index
    %27 = vector.load %arg5[%c0_7, %c0_8] : memref<8x130xf32, #tpu.memory_space<vmem>>, vector<8x130xf32>
    %28 = vector.shape_cast %26 : vector<280x130xf32> to vector<35x8x130xf32>
    %cst_9 = arith.constant dense<0.000000e+00> : vector<8x130xf32>
    %29 = vector.multi_reduction <add>, %28, %cst_9 [0] : vector<35x8x130xf32> to vector<8x130xf32>
    %30 = arith.addf %27, %29 : vector<8x130xf32>
    %c0_10 = arith.constant 0 : index
    %c0_11 = arith.constant 0 : index
    %31 = vector.load %arg5[%c0_10, %c0_11] : memref<8x130xf32, #tpu.memory_space<vmem>>, vector<8x130xf32>
    tpu.vector_store %arg5[%c0_10, %c0_11], %30 {strides = array<i32>} : memref<8x130xf32, #tpu.memory_space<vmem>>, vector<8x130xf32>,
    %c0_i32_12 = arith.constant 0 : i32
    %32 = arith.cmpi eq, %arg1, %c0_i32_12 : i32
    %33 = arith.extui %32 : i1 to i32
    %c0_i32_13 = arith.constant 0 : i32
    %34 = arith.cmpi ne, %33, %c0_i32_13 : i32
    scf.if %34 {
      %c0_14 = arith.constant 0 : index
      %c0_15 = arith.constant 0 : index
      %35 = vector.load %arg5[%c0_14, %c0_15] : memref<8x130xf32, #tpu.memory_space<vmem>>, vector<8x130xf32>
      %c0_16 = arith.constant 0 : index
      %c0_17 = arith.constant 0 : index
      %36 = vector.load %arg4[%c0_16, %c0_17] : memref<8x130xf32, #tpu.memory_space<vmem>>, vector<8x130xf32>
      tpu.vector_store %arg4[%c0_16, %c0_17], %35 {strides = array<i32>} : memref<8x130xf32, #tpu.memory_space<vmem>>, vector<8x130xf32>,
    } else {
    }
    return
  }
  func.func @transform_0(%arg0: i32, %arg1: i32) -> (i32, i32) {
    %c1_i32 = arith.constant 1 : i32
    %0 = arith.muli %arg0, %c1_i32 : i32
    %1 = arith.addi %0, %arg1 : i32
    %c0_i32 = arith.constant 0 : i32
    %c0_i32_0 = arith.constant 0 : i32
    return %1, %c0_i32 : i32, i32
  }
  func.func @transform_1(%arg0: i32, %arg1: i32) -> (i32, i32) {
    %c1_i32 = arith.constant 1 : i32
    %0 = arith.muli %arg0, %c1_i32 : i32
    %1 = arith.addi %0, %arg1 : i32
    %c0_i32 = arith.constant 0 : i32
    %c0_i32_0 = arith.constant 0 : i32
    return %1, %c0_i32 : i32, i32
  }
  func.func @transform_2(%arg0: i32, %arg1: i32) -> (i32, i32) {
    %c0_i32 = arith.constant 0 : i32
    %c0_i32_0 = arith.constant 0 : i32
    return %arg0, %c0_i32 : i32, i32
  }
}

</mosaic_0001>

<bundles_post_ra>
// kernel: tpu_custom_call.1
= control target key start
LH: loop header
LB: loop body
LE: loop exit
PB: predicated region body
PF: predicated region fallthrough
CT: control target
= control target key end

     0   :  { %7 = vsyncpa [#allocation4], 0  ;;  %vm67_vm0 = vcmask 15360   ;;  %v1467_v0 = vmov 0.0   ;;  %s2482_s0 = inlined_call_operand.vmem [shape: f32[275,130], index: 0, kind: input, shape index: {}]   ;;  %s2483_s1 = inlined_call_operand.vmem [shape: f32[275,130], index: 1, kind: input, shape index: {}]   ;;  %s2484_s2 = inlined_call_operand.hbm [shape: f32[8,130], index: 2, kind: output, shape index: {}]  }
   0x1   :  { %68 = vst.msk [vmem:[#allocation2 + $0x8] sm:$0xff] %vm67_vm0, %v1467_v0  ;;  %v69_v1 = vld [vmem:[%s2482_s0] sm:$0xff]  ;;  %v70_v2 = vld [vmem:[%s2482_s0 + $0x8] sm:$0xff]  ;;  %v71_v3 = vld [vmem:[%s2482_s0 + $0x10] sm:$0xff] }
   0x2   :  { %v72_v4 = vld [vmem:[%s2482_s0 + $0x18] sm:$0xff]  ;;  %v209_v5 = vsub.f32 0.0, %v69_v1  ;;  %v73_v6 = vld [vmem:[%s2482_s0 + $0x20] sm:$0xff]  ;;  %v210_v7 = vsub.f32 0.0, %v70_v2  ;;  %v74_v8 = vld [vmem:[%s2482_s0 + $0x28] sm:$0xff]  ;;  %v211_v9 = vsub.f32 0.0, %v71_v3 }
   0x3   :  { %v75_v10 = vld [vmem:[%s2482_s0 + $0x30] sm:$0xff]  ;;  %v212_v11 = vsub.f32 0.0, %v72_v4  ;;  %v76_v12 = vld [vmem:[%s2482_s0 + $0x38] sm:$0xff]  ;;  %v213_v13 = vsub.f32 0.0, %v73_v6  ;;  %v77_v15 = vld [vmem:[%s2482_s0 + $0x40] sm:$0xff]  ;;  %v214_v16 = vsub.f32 0.0, %v74_v8 }
   0x4   :  { %v279_v14 = vmul.f32 1.442695, %v209_v5  ;;  %v281_v17 = vmul.f32 1.442695, %v210_v7  ;;  %v78_v18 = vld [vmem:[%s2482_s0 + $0x48] sm:$0xff]  ;;  %v215_v19 = vsub.f32 0.0, %v75_v10 }
   0x5   :  { %v283_v20 = vmul.f32 1.442695, %v211_v9  ;;  %v79_v21 = vld [vmem:[%s2482_s0 + $0x50] sm:$0xff]  ;;  %v216_v22 = vsub.f32 0.0, %v76_v12  ;;  %v285_v23 = vmul.f32 1.442695, %v212_v11 }
   0x6   :  { %v80_v24 = vld [vmem:[%s2482_s0 + $0x58] sm:$0xff]  ;;  %v217_v25 = vsub.f32 0.0, %v77_v15  ;;  %1163 = vpow2.f32 %v279_v14  ;;  %v287_v26 = vmul.f32 1.442695, %v213_v13  ;;  %v81_v27 = vld [vmem:[%s2482_s0 + $0x60] sm:$0xff]  ;;  %v218_v28 = vsub.f32 0.0, %v78_v18 }
   0x7   :  { %1165 = vpow2.f32 %v281_v17  ;;  %v289_v29 = vmul.f32 1.442695, %v214_v16  ;;  %v82_v30 = vld [vmem:[%s2482_s0 + $0x68] sm:$0xff]  ;;  %v219_v31 = vsub.f32 0.0, %v79_v21  ;;  %v291_v32 = vmul.f32 1.442695, %v215_v19 }
   0x8   :  { %1167 = vpow2.f32 %v283_v20  ;;  %v83_v33 = vld [vmem:[%s2482_s0 + $0x70] sm:$0xff]  ;;  %v220_v34 = vsub.f32 0.0, %v80_v24  ;;  %v293_v35 = vmul.f32 1.442695, %v216_v22  ;;  %v84_v36 = vld [vmem:[%s2482_s0 + $0x78] sm:$0xff]  ;;  %v221_v37 = vsub.f32 0.0, %v81_v27 }
   0x9   :  { %1169 = vpow2.f32 %v285_v23  ;;  %v295_v38 = vmul.f32 1.442695, %v217_v25  ;;  %v85_v39 = vld [vmem:[%s2482_s0 + $0x80] sm:$0xff]  ;;  %v222_v40 = vsub.f32 0.0, %v82_v30  ;;  %v297_v41 = vmul.f32 1.442695, %v218_v28 }
   0xa   :  { %1171 = vpow2.f32 %v287_v26  ;;  %v86_v42 = vld [vmem:[%s2482_s0 + $0x88] sm:$0xff]  ;;  %v223_v43 = vsub.f32 0.0, %v83_v33  ;;  %v299_v44 = vmul.f32 1.442695, %v219_v31  ;;  %v87_v45 = vld [vmem:[%s2482_s0 + $0x90] sm:$0xff]  ;;  %v224_v46 = vsub.f32 0.0, %v84_v36 }
   0xb   :  { %1173 = vpow2.f32 %v289_v29  ;;  %v301_v47 = vmul.f32 1.442695, %v220_v34  ;;  %v88_v48 = vld [vmem:[%s2482_s0 + $0x98] sm:$0xff]  ;;  %v225_v49 = vsub.f32 0.0, %v85_v39  ;;  %v303_v50 = vmul.f32 1.442695, %v221_v37 }
   0xc   :  { %1175 = vpow2.f32 %v291_v32  ;;  %v89_v51 = vld [vmem:[%s2482_s0 + $0xa0] sm:$0xff]  ;;  %v226_v52 = vsub.f32 0.0, %v86_v42  ;;  %v305_v53 = vmul.f32 1.442695, %v222_v40  ;;  %v90_v55 = vld [vmem:[%s2482_s0 + $0xa8] sm:$0xff]  ;;  %v227_v56 = vsub.f32 0.0, %v87_v45 }
   0xd   :  { %1177 = vpow2.f32 %v293_v35  ;;  %v307_v57 = vmul.f32 1.442695, %v223_v43  ;;  %v91_v59 = vld [vmem:[%s2482_s0 + $0xb0] sm:$0xff]  ;;  %v228_v60 = vsub.f32 0.0, %v88_v48  ;;  %v309_v61 = vmul.f32 1.442695, %v224_v46 }
   0xe   :  { %1179 = vpow2.f32 %v295_v38  ;;  %v92_v63 = vld [vmem:[%s2482_s0 + $0xb8] sm:$0xff]  ;;  %v229_v0 = vsub.f32 0.0, %v89_v51  ;;  %v311_v1 = vmul.f32 1.442695, %v225_v49  ;;  %v93_v3 = vld [vmem:[%s2482_s0 + $0xc0] sm:$0xff]  ;;  %v230_v4 = vsub.f32 0.0, %v90_v55 }
   0xf   :  { %1181 = vpow2.f32 %v297_v41  ;;  %v313_v5 = vmul.f32 1.442695, %v226_v52  ;;  %v94_v7 = vld [vmem:[%s2482_s0 + $0xc8] sm:$0xff]  ;;  %v231_v8 = vsub.f32 0.0, %v91_v59  ;;  %v315_v9 = vmul.f32 1.442695, %v227_v56 }
  0x10   :  { %v1548_v54 = vpop.eup %1163  ;;  %1183 = vpow2.f32 %v299_v44  ;;  %v95_v11 = vld [vmem:[%s2482_s0 + $0xd0] sm:$0xff]  ;;  %v232_v12 = vsub.f32 0.0, %v92_v63  ;;  %v317_v13 = vmul.f32 1.442695, %v228_v60  ;;  %v96_v15 = vld [vmem:[%s2482_s0 + $0xd8] sm:$0xff]  ;;  %v233_v16 = vsub.f32 0.0, %v93_v3 }
  0x11   :  { %v1553_v58 = vpop.eup %1165  ;;  %1185 = vpow2.f32 %v301_v47  ;;  %v319_v17 = vmul.f32 1.442695, %v229_v0  ;;  %v97_v19 = vld [vmem:[%s2482_s0 + $0xe0] sm:$0xff]  ;;  %v234_v20 = vsub.f32 0.0, %v94_v7  ;;  %v321_v21 = vmul.f32 1.442695, %v230_v4 }
  0x12   :  { %v1558_v62 = vpop.eup %1167  ;;  %1187 = vpow2.f32 %v303_v50  ;;  %v98_v23 = vld [vmem:[%s2482_s0 + $0xe8] sm:$0xff]  ;;  %v235_v24 = vsub.f32 0.0, %v95_v11  ;;  %v323_v25 = vmul.f32 1.442695, %v231_v8  ;;  %v99_v27 = vld [vmem:[%s2482_s0 + $0xf0] sm:$0xff]  ;;  %v236_v28 = vsub.f32 0.0, %v96_v15 }
  0x13   :  { %v1563_v2 = vpop.eup %1169  ;;  %1189 = vpow2.f32 %v305_v53  ;;  %v325_v29 = vmul.f32 1.442695, %v232_v12  ;;  %v100_v31 = vld [vmem:[%s2482_s0 + $0xf8] sm:$0xff]  ;;  %v237_v32 = vsub.f32 0.0, %v97_v19  ;;  %v327_v33 = vmul.f32 1.442695, %v233_v16 }
  0x14   :  { %v1568_v6 = vpop.eup %1171  ;;  %1191 = vpow2.f32 %v307_v57  ;;  %v101_v35 = vld [vmem:[%s2482_s0 + $0x100] sm:$0xff]  ;;  %v238_v36 = vsub.f32 0.0, %v98_v23  ;;  %v329_v37 = vmul.f32 1.442695, %v234_v20  ;;  %v102_v39 = vld [vmem:[%s2482_s0 + $0x108] sm:$0xff]  ;;  %v239_v40 = vsub.f32 0.0, %v99_v27 }
  0x15   :  { %v1573_v10 = vpop.eup %1173  ;;  %1193 = vpow2.f32 %v309_v61  ;;  %v331_v41 = vmul.f32 1.442695, %v235_v24  ;;  %v103_v43 = vld [vmem:[%s2482_s0 + $0x110] sm:$0xff]  ;;  %v240_v44 = vsub.f32 0.0, %v100_v31  ;;  %v333_v45 = vmul.f32 1.442695, %v236_v28 }
  0x16   :  { %v1578_v14 = vpop.eup %1175  ;;  %1195 = vpow2.f32 %v311_v1  ;;  %v104_v47 = vld [vmem:[%s2482_s0 + $0x118] sm:$0xff]  ;;  %v241_v48 = vsub.f32 0.0, %v101_v35  ;;  %v335_v49 = vmul.f32 1.442695, %v237_v32  ;;  %v105_v51 = vld [vmem:[%s2482_s0 + $0x120] sm:$0xff]  ;;  %v242_v52 = vsub.f32 0.0, %v102_v39 }
  0x17   :  { %v1583_v18 = vpop.eup %1177  ;;  %1197 = vpow2.f32 %v313_v5  ;;  %v337_v53 = vmul.f32 1.442695, %v238_v36  ;;  %v106_v56 = vld [vmem:[%s2482_s0 + $0x128] sm:$0xff]  ;;  %v243_v57 = vsub.f32 0.0, %v103_v43  ;;  %v339_v59 = vmul.f32 1.442695, %v239_v40 }
  0x18   :  { %v1588_v22 = vpop.eup %1179  ;;  %1199 = vpow2.f32 %v315_v9  ;;  %v107_v61 = vld [vmem:[%s2482_s0 + $0x130] sm:$0xff]  ;;  %v244_v63 = vsub.f32 0.0, %v104_v47  ;;  %v341_v0 = vmul.f32 1.442695, %v240_v44  ;;  %v108_v3 = vld [vmem:[%s2482_s0 + $0x138] sm:$0xff]  ;;  %v245_v4 = vsub.f32 0.0, %v105_v51 }
  0x19   :  { %v1593_v26 = vpop.eup %1181  ;;  %1201 = vpow2.f32 %v317_v13  ;;  %v343_v5 = vmul.f32 1.442695, %v241_v48  ;;  %v109_v8 = vld [vmem:[%s2482_s0 + $0x140] sm:$0xff]  ;;  %v246_v9 = vsub.f32 0.0, %v106_v56  ;;  %v345_v11 = vmul.f32 1.442695, %v242_v52 }
  0x1a   :  { %v1598_v30 = vpop.eup %1183  ;;  %1203 = vpow2.f32 %v319_v17  ;;  %v110_v13 = vld [vmem:[%s2482_s0 + $0x148] sm:$0xff]  ;;  %v247_v15 = vsub.f32 0.0, %v107_v61  ;;  %v347_v16 = vmul.f32 1.442695, %v243_v57  ;;  %v111_v19 = vld [vmem:[%s2482_s0 + $0x150] sm:$0xff]  ;;  %v248_v20 = vsub.f32 0.0, %v108_v3 }
  0x1b   :  { %v1603_v34 = vpop.eup %1185  ;;  %1205 = vpow2.f32 %v321_v21  ;;  %v349_v21 = vmul.f32 1.442695, %v244_v63  ;;  %v112_v24 = vld [vmem:[%s2482_s0 + $0x158] sm:$0xff]  ;;  %v351_v27 = vmul.f32 1.442695, %v245_v4  ;;  %v250_v31 = vsub.f32 0.0, %v110_v13 }
  0x1c   :  { %v1608_v38 = vpop.eup %1187  ;;  %1207 = vpow2.f32 %v323_v25  ;;  %v249_v25 = vsub.f32 0.0, %v109_v8  ;;  %v353_v32 = vmul.f32 1.442695, %v246_v9  ;;  %v114_v35 = vld [vmem:[%s2482_s0 + $0x168] sm:$0xff]  ;;  %v251_v36 = vsub.f32 0.0, %v111_v19  ;;  %v115_v40 = vld [vmem:[%s2482_s0 + $0x170] sm:$0xff] }
  0x1d   :  { %v1613_v42 = vpop.eup %1189  ;;  %1209 = vpow2.f32 %v325_v29  ;;  %v113_v29 = vld [vmem:[%s2482_s0 + $0x160] sm:$0xff]  ;;  %v357_v43 = vmul.f32 1.442695, %v248_v20  ;;  %v254_v52 = vsub.f32 0.0, %v114_v35  ;;  %v118_v57 = vld [vmem:[%s2482_s0 + $0x188] sm:$0xff]  ;;  %v120_v8 = vld [vmem:[%s2482_s0 + $0x198] sm:$0xff] }
  0x1e   :  { %v1618_v46 = vpop.eup %1191  ;;  %1211 = vpow2.f32 %v327_v33  ;;  %v253_v47 = vsub.f32 0.0, %v113_v29  ;;  %v359_v48 = vmul.f32 1.442695, %v249_v25  ;;  %v117_v51 = vld [vmem:[%s2482_s0 + $0x180] sm:$0xff]  ;;  %v363_v61 = vmul.f32 1.442695, %v251_v36 }
  0x1f   :  { %v1623_v50 = vpop.eup %1193  ;;  %1213 = vpow2.f32 %v329_v37  ;;  %v355_v37 = vmul.f32 1.442695, %v247_v15  ;;  %v257_v9 = vsub.f32 0.0, %v117_v51  ;;  %v121_v15 = vld [vmem:[%s2482_s0 + $0x1a0] sm:$0xff]  ;;  %v369_v19 = vmul.f32 1.442695, %v254_v52 }
  0x20   :  { %v1628_v55 = vpop.eup %1195  ;;  %1215 = vpow2.f32 %v331_v41  ;;  %v252_v41 = vsub.f32 0.0, %v112_v24  ;;  %v123_v29 = vld [vmem:[%s2482_s0 + $0x1b0] sm:$0xff]  ;;  %v124_v36 = vld [vmem:[%s2482_s0 + $0x1b8] sm:$0xff]  ;;  %v126_v51 = vld [vmem:[%s2482_s0 + $0x1c8] sm:$0xff] }
  0x21   :  { %v1633_v60 = vpop.eup %1197  ;;  %1217 = vpow2.f32 %v333_v45  ;;  %v116_v45 = vld [vmem:[%s2482_s0 + $0x178] sm:$0xff]  ;;  %v263_v52 = vsub.f32 0.0, %v123_v29 }
  0x22   :  { %v1638_v1 = vpop.eup %1199  ;;  %1219 = vpow2.f32 %v335_v49  ;;  %v256_v3 = vsub.f32 0.0, %v116_v45  ;;  %v365_v4 = vmul.f32 1.442695, %v252_v41 }
  0x23   :  { %v1643_v7 = vpop.eup %1201  ;;  %1221 = vpow2.f32 %v337_v53  ;;  %v361_v53 = vmul.f32 1.442695, %v250_v31  ;;  %v260_v31 = vsub.f32 0.0, %v120_v8  ;;  %v387_v29 = vmul.f32 1.442695, %v263_v52  ;;  %v133_v52 = vld [vmem:[%s2482_s0 + $0x200] sm:$0xff] }
  0x24   :  { %v1648_v12 = vpop.eup %1203  ;;  %1223 = vpow2.f32 %v339_v59  ;;  %v255_v59 = vsub.f32 0.0, %v115_v40  ;;  %v375_v40 = vmul.f32 1.442695, %v257_v9 }
  0x25   :  { %v1653_v17 = vpop.eup %1205  ;;  %1225 = vpow2.f32 %v341_v0  ;;  %v119_v0 = vld [vmem:[%s2482_s0 + $0x190] sm:$0xff] }
  0x26   :  { %v1658_v23 = vpop.eup %1207  ;;  %1227 = vpow2.f32 %v343_v5  ;;  %v259_v24 = vsub.f32 0.0, %v119_v0  ;;  %v371_v25 = vmul.f32 1.442695, %v255_v59  ;;  %v127_v59 = vld [vmem:[%s2482_s0 + $0x1d0] sm:$0xff]  ;;  %v381_v0 = vmul.f32 1.442695, %v260_v31 }
  0x27   :  { %v1663_v28 = vpop.eup %1209  ;;  %1229 = vpow2.f32 %v345_v11  ;;  %v367_v11 = vmul.f32 1.442695, %v253_v47 }
  0x28   :  { %v1668_v33 = vpop.eup %1211  ;;  %1231 = vpow2.f32 %v347_v16  ;;  %v258_v16 = vsub.f32 0.0, %v118_v57 }
  0x29   :  { %v1673_v39 = vpop.eup %1213  ;;  %1233 = vpow2.f32 %v349_v21  ;;  %v122_v21 = vld [vmem:[%s2482_s0 + $0x1a8] sm:$0xff] }
  0x2a   :  { %v1678_v44 = vpop.eup %1215  ;;  %1235 = vpow2.f32 %v351_v27  ;;  %v262_v45 = vsub.f32 0.0, %v122_v21  ;;  %v377_v47 = vmul.f32 1.442695, %v258_v16  ;;  %v266_v16 = vsub.f32 0.0, %v126_v51 }
  0x2b   :  { %v1683_v49 = vpop.eup %1217  ;;  %1237 = vpow2.f32 %v353_v32  ;;  %v373_v32 = vmul.f32 1.442695, %v256_v3 }
  0x2c   :  { %v1688_v56 = vpop.eup %1219  ;;  %1239 = vpow2.f32 %v355_v37  ;;  %v261_v37 = vsub.f32 0.0, %v121_v15  ;;  %v129_v15 = vld [vmem:[%s2482_s0 + $0x1e0] sm:$0xff] }
  0x2d   :  { %v1693_v63 = vpop.eup %1221  ;;  %1241 = vpow2.f32 %v357_v43  ;;  %v125_v43 = vld [vmem:[%s2482_s0 + $0x1c0] sm:$0xff] }
  0x2e   :  { %v1698_v5 = vpop.eup %1223  ;;  %1243 = vpow2.f32 %v359_v48  ;;  %v265_v8 = vsub.f32 0.0, %v125_v43  ;;  %v383_v9 = vmul.f32 1.442695, %v261_v37  ;;  %v132_v43 = vld [vmem:[%s2482_s0 + $0x1f8] sm:$0xff] }
  0x2f   :  { %v1703_v13 = vpop.eup %1225  ;;  %1245 = vpow2.f32 %v361_v53  ;;  %v379_v53 = vmul.f32 1.442695, %v259_v24  ;;  %v130_v24 = vld [vmem:[%s2482_s0 + $0x1e8] sm:$0xff] }
  0x30   :  { %v1708_v20 = vpop.eup %1227  ;;  %1247 = vpow2.f32 %v363_v61  ;;  %v264_v61 = vsub.f32 0.0, %v124_v36 }
  0x31   :  { %v1713_v27 = vpop.eup %1229  ;;  %1249 = vpow2.f32 %v365_v4  ;;  %v128_v4 = vld [vmem:[%s2482_s0 + $0x1d8] sm:$0xff] }
  0x32   :  { %v1718_v35 = vpop.eup %1231  ;;  %1251 = vpow2.f32 %v367_v11  ;;  %v268_v36 = vsub.f32 0.0, %v128_v4  ;;  %v389_v37 = vmul.f32 1.442695, %v264_v61  ;;  %v134_v61 = vld [vmem:[%s2482_s0 + $0x208] sm:$0xff] }
  0x33   :  { %v1723_v41 = vpop.eup %1233  ;;  %1253 = vpow2.f32 %v369_v19  ;;  %v385_v19 = vmul.f32 1.442695, %v262_v45  ;;  %v269_v45 = vsub.f32 0.0, %v129_v15 }
  0x34   :  { %v1728_v48 = vpop.eup %1235  ;;  %1255 = vpow2.f32 %v371_v25  ;;  %v267_v25 = vsub.f32 0.0, %v127_v59  ;;  %v393_v59 = vmul.f32 1.442695, %v266_v16  ;;  %v136_v16 = vld [vmem:[%s2482_s0 + $0x218] sm:$0xff] }
  0x35   :  { %v1733_v57 = vpop.eup %1237  ;;  %1257 = vpow2.f32 %v373_v32  ;;  %v131_v32 = vld [vmem:[%s2482_s0 + $0x1f0] sm:$0xff] }
  0x36   :  { %v1738_v3 = vpop.eup %1239  ;;  %1259 = vpow2.f32 %v375_v40  ;;  %v271_v4 = vsub.f32 0.0, %v131_v32  ;;  %v395_v15 = vmul.f32 1.442695, %v267_v25  ;;  %v399_v32 = vmul.f32 1.442695, %v269_v45  ;;  %v137_v25 = vld [vmem:[%s2482_s0 + $0x220] sm:$0xff] }
  0x37   :  { %v1743_v11 = vpop.eup %1241  ;;  %1261 = vpow2.f32 %v377_v47  ;;  %v391_v47 = vmul.f32 1.442695, %v265_v8  ;;  %v135_v8 = vld [vmem:[%s2482_s0 + $0x210] sm:$0xff]  ;;  %v276_v45 = vsub.f32 0.0, %v136_v16 }
  0x38   :  { %v1748_v21 = vpop.eup %1243  ;;  %1263 = vpow2.f32 %v379_v53  ;;  %v270_v53 = vsub.f32 0.0, %v130_v24  ;;  %v397_v24 = vmul.f32 1.442695, %v268_v36  ;;  %v138_v36 = vld [vmem:[%s2482_s0 + $0x228] sm:$0xff] }
  0x39   :  { %2485 = vst [vmem:[#allocation6_spill] sm:$0xff] %v1748_v21  ;;  %v1753_v31 = vpop.eup %1245  ;;  %1265 = vpow2.f32 %v381_v0 }
  0x3a   :  { %2486 = vst [vmem:[#allocation7_spill] sm:$0xff] %v1753_v31  ;;  %v1758_v40 = vpop.eup %1247  ;;  %1267 = vpow2.f32 %v383_v9  ;;  %v277_v31 = vsub.f32 0.0, %v137_v25  ;;  %v420_v25 = vadd.f32 1.0, %v1553_v58  ;;  %v427_v58 = vadd.f32 1.0, %v1588_v22 }
  0x3b   :  { %2487 = vst [vmem:[#allocation8_spill] sm:$0xff] %v1758_v40  ;;  %v1763_v51 = vpop.eup %1249  ;;  %1269 = vpow2.f32 %v385_v19  ;;  %v1839_v22 = vadd.f32 1.0, %v1623_v50  ;;  %v1858_v50 = vadd.f32 1.0, %v1648_v12  ;;  %v1877_v12 = vadd.f32 1.0, %v1673_v39 }
  0x3c   :  { %2488 = vst [vmem:[#allocation9_spill] sm:$0xff] %v1763_v51  ;;  %v1768_v0 = vpop.eup %1251  ;;  %1271 = vpow2.f32 %v387_v29  ;;  %v272_v51 = vsub.f32 0.0, %v132_v43  ;;  %v401_v43 = vmul.f32 1.442695, %v270_v53 }
  0x3d   :  { %2489 = vst [vmem:[#allocation10_spill] sm:$0xff] %v1768_v0  ;;  %v1773_v9 = vpop.eup %1253  ;;  %1273 = vpow2.f32 %v389_v37  ;;  %v273_v0 = vsub.f32 0.0, %v133_v52  ;;  %v403_v52 = vmul.f32 1.442695, %v271_v4 }
  0x3e   :  { %2490 = vst [vmem:[#allocation11_spill] sm:$0xff] %v1773_v9  ;;  %v1778_v19 = vpop.eup %1255  ;;  %1275 = vpow2.f32 %v391_v47  ;;  %v274_v9 = vsub.f32 0.0, %v134_v61  ;;  %v278_v61 = vsub.f32 0.0, %v138_v36 }
  0x3f   :  { %2491 = vst [vmem:[#allocation12_spill] sm:$0xff] %v1778_v19  ;;  %v1783_v29 = vpop.eup %1257  ;;  %1277 = vpow2.f32 %v393_v59  ;;  %v275_v19 = vsub.f32 0.0, %v135_v8  ;;  %v407_v59 = vmul.f32 1.442695, %v273_v0  ;;  %v413_v8 = vmul.f32 1.442695, %v276_v45 }
  0x40   :  { %2492 = vst [vmem:[#allocation13_spill] sm:$0xff] %v1783_v29  ;;  %v1788_v37 = vpop.eup %1259  ;;  %1279 = vpow2.f32 %v395_v15  ;;  %v405_v29 = vmul.f32 1.442695, %v272_v51  ;;  %v415_v51 = vmul.f32 1.442695, %v277_v31  ;;  %v423_v31 = vadd.f32 1.0, %v1568_v6 }
  0x41   :  { %2493 = vst [vmem:[#allocation14_spill] sm:$0xff] %v1788_v37  ;;  %v1793_v47 = vpop.eup %1261  ;;  %1281 = vpow2.f32 %v397_v24  ;;  %v409_v37 = vmul.f32 1.442695, %v274_v9  ;;  %v411_v15 = vmul.f32 1.442695, %v275_v19  ;;  %v419_v9 = vadd.f32 1.0, %v1548_v54 }
  0x42   :  { %v1795_v40 = vpop.eup %1263  ;;  %1283 = vpow2.f32 %v399_v32  ;;  %v417_v0 = vmul.f32 1.442695, %v278_v61  ;;  %v426_v54 = vadd.f32 1.0, %v1583_v18  ;;  %v430_v6 = vadd.f32 1.0, %v1603_v34 }
  0x43   :  { %v1797_v53 = vpop.eup %1265  ;;  %1285 = vpow2.f32 %v401_v43  ;;  %v422_v43 = vadd.f32 1.0, %v1563_v2  ;;  %v429_v2 = vadd.f32 1.0, %v1598_v30  ;;  %v431_v61 = vadd.f32 1.0, %v1608_v38 }
  0x44   :  { %v1799_v21 = vpop.eup %1267  ;;  %1287 = vpow2.f32 %v403_v52  ;;  %v425_v52 = vadd.f32 1.0, %v1578_v14  ;;  %v1836_v18 = vadd.f32 1.0, %v1618_v46  ;;  %v1847_v34 = vadd.f32 1.0, %v1633_v60 }
  0x45   :  { %v1801_v4 = vpop.eup %1269  ;;  %1289 = vpow2.f32 %v405_v29  ;;  %v421_v29 = vadd.f32 1.0, %v1558_v62  ;;  %v428_v62 = vadd.f32 1.0, %v1593_v26  ;;  %v1842_v26 = vadd.f32 1.0, %v1628_v55 }
  0x46   :  { %v1803_v24 = vpop.eup %1271  ;;  %1291 = vpow2.f32 %v407_v59  ;;  %v1850_v38 = vadd.f32 1.0, %v1638_v1  ;;  %v1861_v55 = vadd.f32 1.0, %v1653_v17  ;;  %v1869_v1 = vadd.f32 1.0, %v1663_v28 }
  0x47   :  { %v1805_v16 = vpop.eup %1273  ;;  %1293 = vpow2.f32 %v409_v37  ;;  %v424_v37 = vadd.f32 1.0, %v1573_v10  ;;  %v1831_v10 = vadd.f32 1.0, %v1613_v42  ;;  %v1853_v42 = vadd.f32 1.0, %v1643_v7 }
  0x48   :  { %v1807_v32 = vpop.eup %1275  ;;  %1295 = vpow2.f32 %v411_v15  ;;  %v1864_v15 = vadd.f32 1.0, %v1658_v23  ;;  %v1872_v7 = vadd.f32 1.0, %v1668_v33  ;;  %v1880_v17 = vadd.f32 1.0, %v1678_v44 }
  0x49   :  { %v1811_v19 = vpop.eup %1277  ;;  %1297 = vpow2.f32 %v413_v8  ;;  %v771_v8 = vlaneseq  ;;  %v1883_v23 = vadd.f32 1.0, %v1683_v49  ;;  %v1888_v28 = vadd.f32 1.0, %v1688_v56 }
  0x4a   :  { %v1816_v36 = vpop.eup %1279  ;;  %1299 = vpow2.f32 %v415_v51  ;;  %v1891_v33 = vadd.f32 1.0, %v1693_v63  ;;  %v1899_v44 = vadd.f32 1.0, %v1703_v13  ;;  %v1902_v49 = vadd.f32 1.0, %v1708_v20 }
  0x4b   :  { %v1821_v45 = vpop.eup %1281  ;;  %1301 = vpow2.f32 %v417_v0  ;;  %v1910_v63 = vadd.f32 1.0, %v1718_v35  ;;  %v1920_v20 = vadd.f32 1.0, %v1728_v48 }
  0x4c   :  { %v1826_v59 = vpop.eup %1283  ;;  %1303 = vrcp.f32 %v419_v9  ;;  %v1894_v9 = vadd.f32 1.0, %v1698_v5  ;;  %v1913_v5 = vadd.f32 1.0, %v1723_v41  ;;  %v2497_v41 = vld [vmem:[#allocation6_spill] sm:$0xff] }
  0x4d   :  { %v1833_v14 = vpop.eup %1285  ;;  %1305 = vrcp.f32 %v420_v25  ;;  %v1905_v25 = vadd.f32 1.0, %v1713_v27  ;;  %v1923_v27 = vadd.f32 1.0, %v1733_v57  ;;  %v2503_v57 = vld [vmem:[#allocation9_spill] sm:$0xff] }
  0x4e   :  { %v1844_v30 = vpop.eup %1287  ;;  %1307 = vrcp.f32 %v421_v29  ;;  %v1915_v29 = vshrl.u32 %v771_v8, 7 }
  0x4f   :  { %v1855_v46 = vpop.eup %1289  ;;  %1309 = vrcp.f32 %v422_v43  ;;  %v1926_v43 = vadd.f32 1.0, %v1738_v3  ;;  %v2504_v3 = vld [vmem:[#allocation10_spill] sm:$0xff] }
  0x50   :  { %v1866_v60 = vpop.eup %1291  ;;  %1311 = vrcp.f32 %v423_v31  ;;  %2494 = vst [vmem:[#allocation15_spill] sm:$0xff] %v1915_v29  ;;  %v1929_v31 = vadd.f32 1.0, %v1743_v11  ;;  %v1941_v29 = vadd.f32 1.0, %v2503_v57  ;;  %v1959_v57 = vadd.f32 1.0, %v1793_v47 }
  0x51   :  { %v1874_v51 = vpop.eup %1293  ;;  %1313 = vrcp.f32 %v424_v37  ;;  %2495 = vst [vmem:[#allocation16_spill] sm:$0xff] %v1926_v43  ;;  %v1932_v37 = vadd.f32 1.0, %v2497_v41  ;;  %v2506_v41 = vld [vmem:[#allocation12_spill] sm:$0xff]  ;;  %v1976_v47 = vadd.f32 1.0, %v1803_v24 }
  0x52   :  { %v1885_v0 = vpop.eup %1295  ;;  %1315 = vrcp.f32 %v425_v52  ;;  %2496 = vst [vmem:[#allocation17_spill] sm:$0xff] %v1929_v31  ;;  %v2499_v52 = vld [vmem:[#allocation7_spill] sm:$0xff] }
  0x53   :  { %v1896_v39 = vpop.eup %1297  ;;  %1317 = vrcp.f32 %v426_v54  ;;  %2498 = vst [vmem:[#allocation6_spill] sm:$0xff] %v1932_v37  ;;  %v1935_v54 = vadd.f32 1.0, %v2499_v52  ;;  %v2505_v31 = vld [vmem:[#allocation11_spill] sm:$0xff]  ;;  %v1950_v37 = vadd.f32 1.0, %v2506_v41  ;;  %v2507_v52 = vld [vmem:[#allocation13_spill] sm:$0xff]  ;;  %v1969_v41 = vadd.f32 1.0, %v1799_v21 }
  0x54   :  { %v1907_v56 = vpop.eup %1299  ;;  %1319 = vrcp.f32 %v427_v58  ;;  %v2501_v58 = vld [vmem:[#allocation8_spill] sm:$0xff]  ;;  %v1947_v43 = vadd.f32 1.0, %v2505_v31  ;;  %v1986_v21 = vadd.f32 1.0, %v1811_v19 }
  0x55   :  { %v1917_v13 = vpop.eup %1301  ;;  %1321 = vrcp.f32 %v428_v62  ;;  %2500 = vst [vmem:[#allocation7_spill] sm:$0xff] %v1935_v54  ;;  %v1938_v8 = vadd.f32 1.0, %v2501_v58  ;;  %v1944_v62 = vadd.f32 1.0, %v2504_v3  ;;  %v1966_v3 = vadd.f32 1.0, %v1797_v53 }
  0x56   :  { %v1304_v35 = vpop.eup %1303  ;;  %1323 = vrcp.f32 %v429_v2  ;;  %v1953_v2 = vadd.f32 1.0, %v2507_v52 }
  0x57   :  { %v1306_v48 = vpop.eup %1305  ;;  %2502 = vst [vmem:[#allocation8_spill] sm:$0xff] %v1938_v8  ;;  %1325 = vrcp.f32 %v430_v6  ;;  %v2508_v8 = vld [vmem:[#allocation14_spill] sm:$0xff]  ;;  %v1962_v6 = vadd.f32 1.0, %v1795_v40  ;;  %v1979_v40 = vadd.f32 1.0, %v1805_v16  ;;  %v1996_v16 = vadd.f32 1.0, %v1826_v59 }
  0x58   :  { %v1308_v11 = vpop.eup %1307  ;;  %1327 = vrcp.f32 %v431_v61  ;;  %v1956_v54 = vadd.f32 1.0, %v2508_v8  ;;  %v1972_v61 = vadd.f32 1.0, %v1801_v4  ;;  %v1989_v4 = vadd.f32 1.0, %v1816_v36  ;;  %v139_v36 = vld [vmem:[%s2483_s1] sm:$0xff] }
  0x59   :  { %v1310_v58 = vpop.eup %1309  ;;  %1329 = vrcp.f32 %v1831_v10  ;;  %v1982_v10 = vadd.f32 1.0, %v1807_v32  ;;  %2511 = vst [vmem:[#allocation11_spill] sm:$0xff] %v1996_v16  ;;  %v1999_v32 = vadd.f32 1.0, %v1833_v14  ;;  %v561_v52 = vmul.f32 50.0, %v1308_v11  ;;  %v140_v14 = vld [vmem:[%s2483_s1 + $0x8] sm:$0xff] }
  0x5a   :  { %v1312_v31 = vpop.eup %1311  ;;  %1331 = vrcp.f32 %v1836_v18  ;;  %2509 = vst [vmem:[#allocation9_spill] sm:$0xff] %v1989_v4  ;;  %v1992_v18 = vadd.f32 1.0, %v1821_v45  ;;  %v2006_v45 = vadd.f32 1.0, %v1844_v30  ;;  %v562_v30 = vmul.f32 50.0, %v1310_v58 }
  0x5b   :  { %v1314_v8 = vpop.eup %1313  ;;  %1333 = vrcp.f32 %v1839_v22  ;;  %2512 = vst [vmem:[#allocation12_spill] sm:$0xff] %v1999_v32  ;;  %v559_v22 = vmul.f32 50.0, %v1304_v35  ;;  %v2016_v35 = vadd.f32 1.0, %v1855_v46  ;;  %v2019_v32 = vadd.f32 1.0, %v1866_v60 }
  0x5c   :  { %v1316_v53 = vpop.eup %1315  ;;  %2510 = vst [vmem:[#allocation10_spill] sm:$0xff] %v1992_v18  ;;  %1335 = vrcp.f32 %v1842_v26  ;;  %2513 = vst [vmem:[#allocation13_spill] sm:$0xff] %v2006_v45  ;;  %v560_v26 = vmul.f32 50.0, %v1306_v48  ;;  %v142_v48 = vld [vmem:[%s2483_s1 + $0x18] sm:$0xff]  ;;  %v2026_v11 = vadd.f32 1.0, %v1874_v51  ;;  %v2029_v45 = vadd.f32 1.0, %v1885_v0 }
  0x5d   :  { %v1318_v24 = vpop.eup %1317  ;;  %1337 = vrcp.f32 %v1847_v34  ;;  %v141_v34 = vld [vmem:[%s2483_s1 + $0x10] sm:$0xff]  ;;  %2514 = vst [vmem:[#allocation14_spill] sm:$0xff] %v2016_v35  ;;  %2515 = vst [vmem:[#allocation18_spill] sm:$0xff] %v2019_v32  ;;  %v563_v46 = vmul.f32 50.0, %v1312_v31  ;;  %v2036_v60 = vadd.f32 1.0, %v1896_v39  ;;  %v564_v58 = vmul.f32 50.0, %v1314_v8 }
  0x5e   :  { %v1320_v19 = vpop.eup %1319  ;;  %1339 = vrcp.f32 %v1850_v38  ;;  %2516 = vst [vmem:[#allocation19_spill] sm:$0xff] %v2026_v11  ;;  %2517 = vst [vmem:[#allocation20_spill] sm:$0xff] %v2029_v45  ;;  %v629_v32 = vsub.f32 %v559_v22, %v139_v36  ;;  %v144_v0 = vld [vmem:[%s2483_s1 + $0x28] sm:$0xff]  ;;  %v630_v31 = vsub.f32 %v560_v26, %v140_v14  ;;  %v631_v11 = vsub.f32 %v561_v52, %v141_v34  ;;  %v145_v39 = vld [vmem:[%s2483_s1 + $0x30] sm:$0xff] }
  0x5f   :  { %v1322_v59 = vpop.eup %1321  ;;  %1341 = vrcp.f32 %v1853_v42  ;;  %v143_v42 = vld [vmem:[%s2483_s1 + $0x20] sm:$0xff]  ;;  %2518 = vst [vmem:[#allocation21_spill] sm:$0xff] %v2036_v60  ;;  %v567_v8 = vmul.f32 50.0, %v1320_v19  ;;  %v632_v22 = vsub.f32 %v562_v30, %v142_v48  ;;  %v146_v60 = vld [vmem:[%s2483_s1 + $0x38] sm:$0xff]  ;;  %v2061_v19 = vadd.f32 1.0, %v1917_v13  ;;  %v164_v18 = vld [vmem:[%s2483_s1 + $0xc8] sm:$0xff] }
  0x60   :  { %v1324_v38 = vpop.eup %1323  ;;  %1343 = vrcp.f32 %v1858_v50  ;;  %v565_v50 = vmul.f32 50.0, %v1316_v53  ;;  %v2054_v53 = vadd.f32 1.0, %v1907_v56  ;;  %v568_v26 = vmul.f32 50.0, %v1322_v59  ;;  %v149_v56 = vld [vmem:[%s2483_s1 + $0x50] sm:$0xff]  ;;  %v150_v13 = vld [vmem:[%s2483_s1 + $0x58] sm:$0xff] }
  0x61   :  { %v1326_v35 = vpop.eup %1325  ;;  %1345 = vrcp.f32 %v1861_v55  ;;  %v566_v55 = vmul.f32 50.0, %v1318_v24  ;;  %v633_v52 = vsub.f32 %v563_v46, %v143_v42  ;;  %v148_v24 = vld [vmem:[%s2483_s1 + $0x48] sm:$0xff]  ;;  %2520 = vst [vmem:[#allocation23_spill] sm:$0xff] %v2061_v19  ;;  %v569_v14 = vmul.f32 50.0, %v1324_v38 }
  0x62   :  { %v1328_v51 = vpop.eup %1327  ;;  %1347 = vrcp.f32 %v1864_v15  ;;  %v147_v15 = vld [vmem:[%s2483_s1 + $0x40] sm:$0xff]  ;;  %2519 = vst [vmem:[#allocation22_spill] sm:$0xff] %v2054_v53  ;;  %v634_v34 = vsub.f32 %v564_v58, %v144_v0  ;;  %v635_v59 = vsub.f32 %v565_v50, %v145_v39  ;;  %v2067_v48 = vand.u32 2147483647, %v629_v32  ;;  %v156_v53 = vld [vmem:[%s2483_s1 + $0x88] sm:$0xff] }
  0x63   :  { %v1330_v45 = vpop.eup %1329  ;;  %1349 = vrcp.f32 %v1869_v1  ;;  %v2069_v46 = vand.u32 2147483647, %v630_v31  ;;  %v636_v19 = vsub.f32 %v566_v55, %v146_v60  ;;  %v2074_v38 = vand.u32 2147483647, %v631_v11  ;;  %v151_v39 = vld [vmem:[%s2483_s1 + $0x60] sm:$0xff] }
  0x64   :  { %v1332_v36 = vpop.eup %1331  ;;  %1351 = vrcp.f32 %v1872_v7  ;;  %v570_v7 = vmul.f32 50.0, %v1326_v35  ;;  %v2076_v58 = vand.u32 2147483647, %v632_v22  ;;  %v571_v35 = vmul.f32 50.0, %v1328_v51 }
  0x65   :  { %v1334_v1 = vpop.eup %1333  ;;  %1353 = vrcp.f32 %v1877_v12  ;;  %v637_v12 = vsub.f32 %v567_v8, %v147_v15  ;;  %v638_v50 = vsub.f32 %v568_v26, %v148_v24  ;;  %v2079_v32 = vand.u32 2147483647, %v633_v52 }
  0x66   :  { %v1336_v30 = vpop.eup %1335  ;;  %1355 = vrcp.f32 %v1880_v17  ;;  %v572_v60 = vmul.f32 50.0, %v1330_v45  ;;  %v639_v55 = vsub.f32 %v569_v14, %v149_v56  ;;  %v2085_v11 = vand.u32 2147483647, %v634_v34  ;;  %v152_v17 = vld [vmem:[%s2483_s1 + $0x68] sm:$0xff] }
  0x67   :  { %v1338_v42 = vpop.eup %1337  ;;  %1357 = vrcp.f32 %v1883_v23  ;;  %v573_v51 = vmul.f32 50.0, %v1332_v36  ;;  %v640_v22 = vsub.f32 %v570_v7, %v150_v13  ;;  %v2091_v15 = vand.u32 2147483647, %v635_v59  ;;  %v153_v23 = vld [vmem:[%s2483_s1 + $0x70] sm:$0xff] }
  0x68   :  { %v1340_v0 = vpop.eup %1339  ;;  %1359 = vrcp.f32 %v1888_v28  ;;  %v574_v45 = vmul.f32 50.0, %v1334_v1  ;;  %v2097_v52 = vand.u32 2147483647, %v636_v19  ;;  %v2099_v24 = vand.u32 2147483647, %v637_v12  ;;  %v154_v28 = vld [vmem:[%s2483_s1 + $0x78] sm:$0xff] }
  0x69   :  { %v1342_v31 = vpop.eup %1341  ;;  %1361 = vrcp.f32 %v1891_v33  ;;  %v575_v36 = vmul.f32 50.0, %v1336_v30  ;;  %v641_v34 = vsub.f32 %v571_v35, %v151_v39  ;;  %v2105_v56 = vand.u32 2147483647, %v638_v50  ;;  %v155_v33 = vld [vmem:[%s2483_s1 + $0x80] sm:$0xff] }
  0x6a   :  { %v1344_v8 = vpop.eup %1343  ;;  %1363 = vrcp.f32 %v1894_v9  ;;  %v576_v1 = vmul.f32 50.0, %v1338_v42  ;;  %v577_v19 = vmul.f32 50.0, %v1340_v0  ;;  %v642_v59 = vsub.f32 %v572_v60, %v152_v17  ;;  %v157_v9 = vld [vmem:[%s2483_s1 + $0x90] sm:$0xff]  ;;  %v158_v0 = vld [vmem:[%s2483_s1 + $0x98] sm:$0xff]  ;;  %v159_v17 = vld [vmem:[%s2483_s1 + $0xa0] sm:$0xff] }
  0x6b   :  { %v1346_v26 = vpop.eup %1345  ;;  %v2110_v13 = vand.u32 2147483647, %v639_v55  ;;  %1365 = vrcp.f32 %v1899_v44  ;;  %v578_v30 = vmul.f32 50.0, %v1342_v31  ;;  %v643_v35 = vsub.f32 %v573_v51, %v153_v23  ;;  %v160_v44 = vld [vmem:[%s2483_s1 + $0xa8] sm:$0xff] }
  0x6c   :  { %v1348_v14 = vpop.eup %1347  ;;  %v2119_v50 = vand.u32 2147483647, %v640_v22  ;;  %1367 = vrcp.f32 %v1902_v49  ;;  %v579_v39 = vmul.f32 50.0, %v1344_v8  ;;  %v580_v60 = vmul.f32 50.0, %v1346_v26  ;;  %v161_v49 = vld [vmem:[%s2483_s1 + $0xb0] sm:$0xff]  ;;  %v162_v8 = vld [vmem:[%s2483_s1 + $0xb8] sm:$0xff] }
  0x6d   :  { %v1350_v7 = vpop.eup %1349  ;;  %v644_v55 = vsub.f32 %v574_v45, %v154_v28  ;;  %v581_v31 = vmul.f32 50.0, %v1348_v14  ;;  %v645_v22 = vsub.f32 %v575_v36, %v155_v33  ;;  %v2131_v23 = vand.u32 2147483647, %v641_v34  ;;  %v163_v33 = vld [vmem:[%s2483_s1 + $0xc0] sm:$0xff] }
  0x6e   :  { %v1352_v12 = vpop.eup %1351  ;;  %v582_v51 = vmul.f32 50.0, %v1350_v7  ;;  %1369 = vrcp.f32 %v1905_v25  ;;  %v646_v26 = vsub.f32 %v576_v1, %v156_v53  ;;  %v647_v45 = vsub.f32 %v577_v19, %v157_v9 }
  0x6f   :  { %v1354_v42 = vpop.eup %1353  ;;  %v2140_v28 = vand.u32 2147483647, %v642_v59  ;;  %1371 = vrcp.f32 %v1910_v63  ;;  %v583_v14 = vmul.f32 50.0, %v1352_v12  ;;  %v648_v34 = vsub.f32 %v578_v30, %v158_v0 }
  0x70   :  { %v1356_v16 = vpop.eup %1355  ;;  %v584_v36 = vmul.f32 50.0, %v1354_v42  ;;  %v649_v25 = vsub.f32 %v579_v39, %v159_v17  ;;  %v650_v53 = vsub.f32 %v580_v60, %v160_v44  ;;  %v2149_v1 = vand.u32 2147483647, %v643_v35  ;;  %v165_v35 = vld [vmem:[%s2483_s1 + $0xd0] sm:$0xff]  ;;  %v166_v44 = vld [vmem:[%s2483_s1 + $0xd8] sm:$0xff] }
  0x71   :  { %v1358_v7 = vpop.eup %1357  ;;  %v2151_v19 = vand.u32 2147483647, %v644_v55  ;;  %1373 = vrcp.f32 %v1913_v5  ;;  %v651_v63 = vsub.f32 %v581_v31, %v161_v49  ;;  %v652_v12 = vsub.f32 %v582_v51, %v162_v8  ;;  %v2521_v49 = vld [vmem:[#allocation16_spill] sm:$0xff] }
  0x72   :  { %v1360_v59 = vpop.eup %1359  ;;  %v2154_v9 = vand.u32 2147483647, %v645_v22  ;;  %1375 = vrcp.f32 %v1920_v20  ;;  %v585_v42 = vmul.f32 50.0, %v1356_v16  ;;  %v2157_v0 = vand.u32 2147483647, %v646_v26  ;;  %v167_v22 = vld [vmem:[%s2483_s1 + $0xe0] sm:$0xff] }
  0x73   :  { %v1362_v30 = vpop.eup %1361  ;;  %v2159_v4 = vand.u32 2147483647, %v647_v45  ;;  %v586_v60 = vmul.f32 50.0, %v1358_v7  ;;  %v653_v55 = vsub.f32 %v583_v14, %v163_v33  ;;  %v654_v5 = vsub.f32 %v584_v36, %v164_v18  ;;  %v2522_v14 = vld [vmem:[#allocation17_spill] sm:$0xff]  ;;  %v169_v33 = vld [vmem:[%s2483_s1 + $0xf0] sm:$0xff] }
  0x74   :  { %v1364_v39 = vpop.eup %1363  ;;  %v2164_v17 = vand.u32 2147483647, %v648_v34  ;;  %1377 = vrcp.f32 %v1923_v27  ;;  %v587_v20 = vmul.f32 50.0, %v1360_v59  ;;  %v2170_v16 = vand.u32 2147483647, %v649_v25  ;;  %v168_v27 = vld [vmem:[%s2483_s1 + $0xe8] sm:$0xff] }
  0x75   :  { %v2172_v31 = vand.u32 2147483647, %v650_v53  ;;  %v1366_v51 = vpop.eup %1365  ;;  %1379 = vrcp.f32 %v2521_v49  ;;  %v588_v18 = vmul.f32 50.0, %v1362_v30  ;;  %v2178_v8 = vand.u32 2147483647, %v651_v63  ;;  %v2523_v25 = vld [vmem:[#allocation6_spill] sm:$0xff] }
  0x76   :  { %v2180_v26 = vand.u32 2147483647, %v652_v12  ;;  %v1368_v45 = vpop.eup %1367  ;;  %1381 = vrcp.f32 %v2522_v14  ;;  %v589_v36 = vmul.f32 50.0, %v1364_v39  ;;  %v655_v34 = vsub.f32 %v585_v42, %v165_v35  ;;  %v2524_v35 = vld [vmem:[#allocation7_spill] sm:$0xff] }
  0x77   :  { %v1020_v7 = vadd.f32 %v2074_v38, %v2067_v48  ;;  %1383 = vrcp.f32 %v2523_v25  ;;  %v656_v53 = vsub.f32 %v586_v60, %v166_v44  ;;  %v2192_v59 = vand.u32 2147483647, %v653_v55  ;;  %v170_v38 = vld [vmem:[%s2483_s1 + $0xf8] sm:$0xff]  ;;  %v171_v44 = vld [vmem:[%s2483_s1 + $0x100] sm:$0xff] }
  0x78   :  { %v2194_v63 = vand.u32 2147483647, %v654_v5  ;;  %v1370_v12 = vpop.eup %1369  ;;  %v590_v30 = vmul.f32 50.0, %v1366_v51  ;;  %v657_v49 = vsub.f32 %v587_v20, %v167_v22  ;;  %v1055_v42 = vsel %vm67_vm0, %v2069_v46, 0.0 }
  0x79   :  { %v1021_v39 = vadd.f32 %v1020_v7, %v2079_v32  ;;  %v1372_v48 = vpop.eup %1371  ;;  %1385 = vrcp.f32 %v2524_v35  ;;  %v591_v60 = vmul.f32 50.0, %v1368_v45  ;;  %v658_v55 = vsub.f32 %v588_v18, %v168_v27  ;;  %v2525_v32 = vld [vmem:[#allocation8_spill] sm:$0xff] }
  0x7a   :  { %v1056_v5 = vsel %vm67_vm0, %v2076_v58, 0.0  ;;  %1387 = vrcp.f32 %v2525_v32  ;;  %v659_v20 = vsub.f32 %v589_v36, %v169_v33  ;;  %v2209_v46 = vand.u32 2147483647, %v655_v34  ;;  %v172_v58 = vld [vmem:[%s2483_s1 + $0x108] sm:$0xff] }
  0x7b   :  { %v1022_v51 = vadd.f32 %v1021_v39, %v2091_v15  ;;  %v1374_v22 = vpop.eup %1373  ;;  %1389 = vrcp.f32 %v1941_v29  ;;  %v592_v14 = vmul.f32 50.0, %v1370_v12  ;;  %v2213_v45 = vand.u32 2147483647, %v656_v53  ;;  %v173_v15 = vld [vmem:[%s2483_s1 + $0x110] sm:$0xff]  ;;  %v174_v39 = vld [vmem:[%s2483_s1 + $0x118] sm:$0xff] }
  0x7c   :  { %v1057_v18 = vadd.f32 %v1056_v5, %v1055_v42  ;;  %v1376_v27 = vpop.eup %1375  ;;  %v593_v7 = vmul.f32 50.0, %v1372_v48  ;;  %v660_v25 = vsub.f32 %v590_v30, %v170_v38  ;;  %v2218_v35 = vand.u32 2147483647, %v657_v49 }
  0x7d   :  { %v1023_v36 = vadd.f32 %v1022_v51, %v2099_v24  ;;  %1391 = vrcp.f32 %v1944_v62  ;;  %v661_v29 = vsub.f32 %v591_v60, %v171_v44  ;;  %v2225_v34 = vand.u32 2147483647, %v658_v55 }
  0x7e   :  { %v1058_v33 = vsel %vm67_vm0, %v2085_v11, 0.0  ;;  %v1378_v53 = vpop.eup %1377  ;;  %1393 = vrcp.f32 %v1947_v43  ;;  %v594_v12 = vmul.f32 50.0, %v1374_v22  ;;  %v2230_v30 = vand.u32 2147483647, %v659_v20  ;;  %v175_v43 = vld [vmem:[%s2483_s1 + $0x120] sm:$0xff]  ;;  %v176_v20 = vld [vmem:[%s2483_s1 + $0x128] sm:$0xff] }
  0x7f   :  { %v1024_v24 = vadd.f32 %v1023_v36, %v2110_v13  ;;  %v1380_v49 = vpop.eup %1379  ;;  %1395 = vrcp.f32 %v1950_v37  ;;  %v595_v62 = vmul.f32 50.0, %v1376_v27  ;;  %v662_v42 = vsub.f32 %v592_v14, %v172_v58 }
  0x80   :  { %v1059_v48 = vadd.f32 %v1058_v33, %v1057_v18  ;;  %v1382_v38 = vpop.eup %1381  ;;  %1397 = vrcp.f32 %v1953_v2  ;;  %v663_v11 = vsub.f32 %v593_v7, %v173_v15  ;;  %v2241_v60 = vand.u32 2147483647, %v660_v25 }
  0x81   :  { %v1025_v13 = vadd.f32 %v1024_v24, %v2131_v23  ;;  %v1384_v55 = vpop.eup %1383  ;;  %v596_v5 = vmul.f32 50.0, %v1378_v53  ;;  %v2244_v44 = vand.u32 2147483647, %v661_v29  ;;  %v1060_v37 = vsel %vm67_vm0, %v2097_v52, 0.0  ;;  %v178_v29 = vld [vmem:[%s2483_s1 + $0x138] sm:$0xff] }
  0x82   :  { %v1062_v32 = vsel %vm67_vm0, %v2105_v56, 0.0  ;;  %1399 = vrcp.f32 %v1956_v54  ;;  %v664_v2 = vsub.f32 %v594_v12, %v174_v39  ;;  %v1061_v23 = vadd.f32 %v1060_v37, %v1059_v48  ;;  %v177_v56 = vld [vmem:[%s2483_s1 + $0x130] sm:$0xff] }
  0x83   :  { %v1026_v51 = vadd.f32 %v1025_v13, %v2149_v1  ;;  %v1386_v22 = vpop.eup %1385  ;;  %v597_v14 = vmul.f32 50.0, %v1380_v49  ;;  %v665_v18 = vsub.f32 %v595_v62, %v175_v43  ;;  %v2255_v27 = vand.u32 2147483647, %v662_v42 }
  0x84   :  { %v1064_v52 = vsel %vm67_vm0, %v2119_v50, 0.0  ;;  %v1388_v58 = vpop.eup %1387  ;;  %1401 = vrcp.f32 %v1959_v57  ;;  %v2263_v54 = vand.u32 2147483647, %v663_v11  ;;  %v1063_v7 = vadd.f32 %v1062_v32, %v1061_v23 }
  0x85   :  { %v1027_v1 = vadd.f32 %v1026_v51, %v2154_v9  ;;  %v1390_v25 = vpop.eup %1389  ;;  %1403 = vrcp.f32 %v1962_v6  ;;  %v598_v36 = vmul.f32 50.0, %v1382_v38  ;;  %v666_v15 = vsub.f32 %v596_v5, %v176_v20  ;;  %v179_v6 = vld [vmem:[%s2483_s1 + $0x140] sm:$0xff]  ;;  %v180_v38 = vld [vmem:[%s2483_s1 + $0x148] sm:$0xff] }
  0x86   :  { %v1066_v50 = vsel %vm67_vm0, %v2140_v28, 0.0  ;;  %v599_v33 = vmul.f32 50.0, %v1384_v55  ;;  %v2272_v53 = vand.u32 2147483647, %v664_v2  ;;  %v1065_v12 = vadd.f32 %v1064_v52, %v1063_v7  ;;  %v182_v2 = vld [vmem:[%s2483_s1 + $0x158] sm:$0xff]  ;;  %v184_v7 = vld [vmem:[%s2483_s1 + $0x168] sm:$0xff] }
  0x87   :  { %v1028_v57 = vadd.f32 %v1027_v1, %v2159_v4  ;;  %v1392_v9 = vpop.eup %1391  ;;  %1405 = vrcp.f32 %v1966_v3  ;;  %v667_v24 = vsub.f32 %v597_v14, %v177_v56  ;;  %v2279_v49 = vand.u32 2147483647, %v665_v18 }
  0x88   :  { %v1068_v28 = vsel %vm67_vm0, %v2151_v19, 0.0  ;;  %v1394_v39 = vpop.eup %1393  ;;  %1407 = vrcp.f32 %v1969_v41  ;;  %v600_v62 = vmul.f32 50.0, %v1386_v22  ;;  %v1067_v42 = vadd.f32 %v1066_v50, %v1065_v12  ;;  %v181_v41 = vld [vmem:[%s2483_s1 + $0x150] sm:$0xff] }
  0x89   :  { %v1029_v4 = vadd.f32 %v1028_v57, %v2170_v16  ;;  %v1396_v48 = vpop.eup %1395  ;;  %v601_v43 = vmul.f32 50.0, %v1388_v58  ;;  %v668_v3 = vsub.f32 %v598_v36, %v178_v29  ;;  %v2288_v11 = vand.u32 2147483647, %v666_v15 }
  0x8a   :  { %v1070_v13 = vsel %vm67_vm0, %v2157_v0, 0.0  ;;  %v1398_v19 = vpop.eup %1397  ;;  %1409 = vrcp.f32 %v1972_v61  ;;  %v669_v16 = vsub.f32 %v599_v33, %v179_v6  ;;  %v1069_v5 = vadd.f32 %v1068_v28, %v1067_v42  ;;  %v2526_v6 = vld [vmem:[#allocation9_spill] sm:$0xff] }
  0x8b   :  { %v1030_v55 = vadd.f32 %v1029_v4, %v2178_v8  ;;  %1411 = vrcp.f32 %v1976_v47  ;;  %v602_v37 = vmul.f32 50.0, %v1390_v25  ;;  %v2298_v32 = vand.u32 2147483647, %v667_v24  ;;  %v183_v47 = vld [vmem:[%s2483_s1 + $0x160] sm:$0xff] }
  0x8c   :  { %v1072_v20 = vsel %vm67_vm0, %v2164_v17, 0.0  ;;  %v1400_v0 = vpop.eup %1399  ;;  %v603_v51 = vmul.f32 50.0, %v1392_v9  ;;  %v670_v23 = vsub.f32 %v600_v62, %v180_v38  ;;  %v1071_v22 = vadd.f32 %v1070_v13, %v1069_v5  ;;  %v186_v9 = vld [vmem:[%s2483_s1 + $0x178] sm:$0xff]  ;;  %v2528_v13 = vld [vmem:[#allocation11_spill] sm:$0xff] }
  0x8d   :  { %v1031_v61 = vadd.f32 %v1030_v55, %v2192_v59  ;;  %1413 = vrcp.f32 %v1979_v40  ;;  %v671_v8 = vsub.f32 %v601_v43, %v181_v41  ;;  %v2310_v14 = vand.u32 2147483647, %v668_v3 }
  0x8e   :  { %v1074_v17 = vsel %vm67_vm0, %v2172_v31, 0.0  ;;  %v1402_v18 = vpop.eup %1401  ;;  %v604_v52 = vmul.f32 50.0, %v1394_v39  ;;  %v2314_v58 = vand.u32 2147483647, %v669_v16  ;;  %v1073_v59 = vadd.f32 %v1072_v20, %v1071_v22  ;;  %v185_v31 = vld [vmem:[%s2483_s1 + $0x170] sm:$0xff]  ;;  %v188_v16 = vld [vmem:[%s2483_s1 + $0x188] sm:$0xff] }
  0x8f   :  { %v1032_v56 = vadd.f32 %v1031_v61, %v2209_v46  ;;  %v1404_v1 = vpop.eup %1403  ;;  %1415 = vrcp.f32 %v1982_v10  ;;  %v605_v40 = vmul.f32 50.0, %v1396_v48  ;;  %v672_v25 = vsub.f32 %v602_v37, %v182_v2  ;;  %v2527_v48 = vld [vmem:[#allocation10_spill] sm:$0xff]  ;;  %v2529_v2 = vld [vmem:[#allocation12_spill] sm:$0xff]  ;;  %v2530_v61 = vld [vmem:[#allocation13_spill] sm:$0xff] }
  0x90   :  { %v1076_v36 = vsel %vm67_vm0, %v2180_v26, 0.0  ;;  %v673_v15 = vsub.f32 %v603_v51, %v183_v47  ;;  %v2326_v50 = vand.u32 2147483647, %v670_v23  ;;  %v1075_v29 = vadd.f32 %v1074_v17, %v1073_v59  ;;  %v190_v17 = vld [vmem:[%s2483_s1 + $0x198] sm:$0xff] }
  0x91   :  { %v1033_v46 = vadd.f32 %v1032_v56, %v2218_v35  ;;  %v1406_v33 = vpop.eup %1405  ;;  %1417 = vrcp.f32 %v1986_v21  ;;  %v606_v57 = vmul.f32 50.0, %v1398_v19  ;;  %v2330_v10 = vand.u32 2147483647, %v671_v8 }
  0x92   :  { %v1078_v12 = vsel %vm67_vm0, %v2194_v63, 0.0  ;;  %v1408_v26 = vpop.eup %1407  ;;  %1419 = vrcp.f32 %v2526_v6  ;;  %v674_v24 = vsub.f32 %v604_v52, %v184_v7  ;;  %v1077_v28 = vadd.f32 %v1076_v36, %v1075_v29  ;;  %v187_v63 = vld [vmem:[%s2483_s1 + $0x180] sm:$0xff] }
  0x93   :  { %v1034_v35 = vadd.f32 %v1033_v46, %v2230_v30  ;;  %v607_v39 = vmul.f32 50.0, %v1400_v0  ;;  %v675_v62 = vsub.f32 %v605_v40, %v185_v31  ;;  %v2339_v21 = vand.u32 2147483647, %v672_v25  ;;  %v189_v0 = vld [vmem:[%s2483_s1 + $0x190] sm:$0xff]  ;;  %v191_v25 = vld [vmem:[%s2483_s1 + $0x1a0] sm:$0xff] }
  0x94   :  { %v1080_v4 = vsel %vm67_vm0, %v2213_v45, 0.0  ;;  %v1410_v42 = vpop.eup %1409  ;;  %1421 = vrcp.f32 %v2527_v48  ;;  %v2347_v38 = vand.u32 2147483647, %v673_v15  ;;  %v1079_v30 = vadd.f32 %v1078_v12, %v1077_v28  ;;  %v2532_v36 = vld [vmem:[#allocation18_spill] sm:$0xff]  ;;  %v192_v12 = vld [vmem:[%s2483_s1 + $0x1a8] sm:$0xff] }
  0x95   :  { %v1035_v43 = vadd.f32 %v1034_v35, %v2244_v44  ;;  %v1412_v3 = vpop.eup %1411  ;;  %1423 = vrcp.f32 %v2528_v13  ;;  %v608_v19 = vmul.f32 50.0, %v1402_v18  ;;  %v676_v41 = vsub.f32 %v606_v57, %v186_v9  ;;  %v2531_v18 = vld [vmem:[#allocation14_spill] sm:$0xff]  ;;  %v193_v35 = vld [vmem:[%s2483_s1 + $0x1b0] sm:$0xff]  ;;  %v2535_v28 = vld [vmem:[#allocation19_spill] sm:$0xff] }
  0x96   :  { %v1082_v45 = vsel %vm67_vm0, %v2225_v34, 0.0  ;;  %v609_v55 = vmul.f32 50.0, %v1404_v1  ;;  %v2356_v5 = vand.u32 2147483647, %v674_v24  ;;  %v1081_v20 = vadd.f32 %v1080_v4, %v1079_v30  ;;  %v195_v30 = vld [vmem:[%s2483_s1 + $0x1c0] sm:$0xff] }
  0x97   :  { %v1036_v37 = vadd.f32 %v1035_v43, %v2263_v54  ;;  %v1414_v44 = vpop.eup %1413  ;;  %1425 = vrcp.f32 %v2529_v2  ;;  %v677_v51 = vsub.f32 %v607_v39, %v187_v63  ;;  %v745_v23 = vand.u32 2147483647, %v675_v62 }
  0x98   :  { %v1084_v34 = vsel %vm67_vm0, %v2241_v60, 0.0  ;;  %1427 = vrcp.f32 %v2530_v61  ;;  %v610_v22 = vmul.f32 50.0, %v1406_v33  ;;  %v1083_v8 = vadd.f32 %v1082_v45, %v1081_v20  ;;  %v2533_v33 = vld [vmem:[#allocation22_spill] sm:$0xff]  ;;  %v2537_v45 = vld [vmem:[#allocation23_spill] sm:$0xff] }
  0x99   :  { %v1037_v47 = vadd.f32 %v1036_v37, %v2279_v49  ;;  %v1416_v54 = vpop.eup %1415  ;;  %1429 = vrcp.f32 %v2531_v18  ;;  %v678_v52 = vsub.f32 %v608_v19, %v188_v16  ;;  %v2371_v56 = vand.u32 2147483647, %v676_v41 }
  0x9a   :  { %v1086_v59 = vsel %vm67_vm0, %v2255_v27, 0.0  ;;  %v611_v60 = vmul.f32 50.0, %v1408_v26  ;;  %v679_v1 = vsub.f32 %v609_v55, %v189_v0  ;;  %v1085_v40 = vadd.f32 %v1084_v34, %v1083_v8  ;;  %v2534_v26 = vld [vmem:[#allocation20_spill] sm:$0xff]  ;;  %v196_v34 = vld [vmem:[%s2483_s1 + $0x1c8] sm:$0xff] }
  0x9b   :  { %v1038_v7 = vadd.f32 %v1037_v47, %v2298_v32  ;;  %v1418_v49 = vpop.eup %1417  ;;  %1431 = vrcp.f32 %v2532_v36  ;;  %v612_v31 = vmul.f32 50.0, %v1410_v42  ;;  %v747_v15 = vand.u32 2147483647, %v677_v51 }
  0x9c   :  { %v1088_v46 = vsel %vm67_vm0, %v2272_v53, 0.0  ;;  %v1420_v29 = vpop.eup %1419  ;;  %1433 = vrcp.f32 %v2533_v33  ;;  %v680_v27 = vsub.f32 %v610_v22, %v190_v17  ;;  %v1087_v32 = vadd.f32 %v1086_v59, %v1085_v40 }
  0x9d   :  { %v1039_v57 = vadd.f32 %v1038_v7, %v2314_v58  ;;  %1435 = vrcp.f32 %v2534_v26  ;;  %v613_v9 = vmul.f32 50.0, %v1412_v3  ;;  %v2388_v6 = vand.u32 2147483647, %v678_v52  ;;  %v2536_v3 = vld [vmem:[#allocation21_spill] sm:$0xff]  ;;  %v199_v52 = vld [vmem:[%s2483_s1 + $0x1e0] sm:$0xff] }
  0x9e   :  { %v1090_v24 = vsel %vm67_vm0, %v2288_v11, 0.0  ;;  %v1422_v53 = vpop.eup %1421  ;;  %1437 = vrcp.f32 %v2535_v28  ;;  %v681_v58 = vsub.f32 %v611_v60, %v191_v25  ;;  %v1089_v62 = vadd.f32 %v1088_v46, %v1087_v32  ;;  %v194_v11 = vld [vmem:[%s2483_s1 + $0x1b8] sm:$0xff]  ;;  %v200_v32 = vld [vmem:[%s2483_s1 + $0x1e8] sm:$0xff] }
  0x9f   :  { %v1040_v39 = vadd.f32 %v1039_v57, %v2330_v10  ;;  %v1424_v4 = vpop.eup %1423  ;;  %v614_v42 = vmul.f32 50.0, %v1414_v44  ;;  %v615_v63 = vmul.f32 50.0, %v1416_v54  ;;  %v749_v48 = vand.u32 2147483647, %v679_v1 }
  0xa0   :  { %v1092_v43 = vsel %vm67_vm0, %v2310_v14, 0.0  ;;  %1439 = vrcp.f32 %v2536_v3  ;;  %v682_v13 = vsub.f32 %v612_v31, %v192_v12  ;;  %v1091_v19 = vadd.f32 %v1090_v24, %v1089_v62  ;;  %v207_v62 = vld [vmem:[%s2483_s1 + $0x220] sm:$0xff] }
  0xa1   :  { %v1041_v10 = vadd.f32 %v1040_v39, %v2347_v38  ;;  %v1426_v41 = vpop.eup %1425  ;;  %1441 = vrcp.f32 %v2537_v45  ;;  %v683_v16 = vsub.f32 %v613_v9, %v193_v35  ;;  %v750_v55 = vand.u32 2147483647, %v680_v27  ;;  %v197_v38 = vld [vmem:[%s2483_s1 + $0x1d0] sm:$0xff] }
  0xa2   :  { %v1094_v14 = vsel %vm67_vm0, %v2326_v50, 0.0  ;;  %v1428_v37 = vpop.eup %1427  ;;  %v616_v20 = vmul.f32 50.0, %v1418_v49  ;;  %v617_v44 = vmul.f32 50.0, %v1420_v29  ;;  %v1093_v2 = vadd.f32 %v1092_v43, %v1091_v19  ;;  %v201_v49 = vld [vmem:[%s2483_s1 + $0x1f0] sm:$0xff] }
  0xa3   :  { %v1042_v0 = vadd.f32 %v1041_v10, %v745_v23  ;;  %v1430_v51 = vpop.eup %1429  ;;  %v684_v61 = vsub.f32 %v614_v42, %v194_v11  ;;  %v685_v22 = vsub.f32 %v615_v63, %v195_v30  ;;  %v751_v47 = vand.u32 2147483647, %v681_v58  ;;  %v205_v11 = vld [vmem:[%s2483_s1 + $0x210] sm:$0xff] }
  0xa4   :  { %v1096_v50 = vsel %vm67_vm0, %v2339_v21, 0.0  ;;  %v619_v8 = vmul.f32 50.0, %v1424_v4  ;;  %v752_v54 = vand.u32 2147483647, %v682_v13  ;;  %v1095_v23 = vadd.f32 %v1094_v14, %v1093_v2  ;;  %v198_v21 = vld [vmem:[%s2483_s1 + $0x1d8] sm:$0xff] }
  0xa5   :  { %v1043_v17 = vadd.f32 %v1042_v0, %v747_v15  ;;  %v1432_v18 = vpop.eup %1431  ;;  %v618_v59 = vmul.f32 50.0, %v1422_v53  ;;  %v621_v60 = vmul.f32 50.0, %v1428_v37  ;;  %v753_v1 = vand.u32 2147483647, %v683_v16  ;;  %v203_v53 = vld [vmem:[%s2483_s1 + $0x200] sm:$0xff]  ;;  %v204_v0 = vld [vmem:[%s2483_s1 + $0x208] sm:$0xff] }
  0xa6   :  { %v1098_v7 = vsel %vm67_vm0, %v2356_v5, 0.0  ;;  %v1434_v40 = vpop.eup %1433  ;;  %v686_v25 = vsub.f32 %v616_v20, %v196_v34  ;;  %v687_v36 = vsub.f32 %v617_v44, %v197_v38  ;;  %v1097_v15 = vadd.f32 %v1096_v50, %v1095_v23  ;;  %v208_v38 = vld [vmem:[%s2483_s1 + $0x228] sm:$0xff] }
  0xa7   :  { %v1044_v31 = vadd.f32 %v1043_v17, %v749_v48  ;;  %v1436_v46 = vpop.eup %1435  ;;  %v620_v29 = vmul.f32 50.0, %v1426_v41  ;;  %v754_v33 = vand.u32 2147483647, %v684_v61  ;;  %v755_v27 = vand.u32 2147483647, %v685_v22  ;;  %v2538_v17 = vld [vmem:[#allocation15_spill] sm:$0xff] }
  0xa8   :  { %v1100_v5 = vsel %vm67_vm0, %v2371_v56, 0.0  ;;  %v1438_v57 = vpop.eup %1437  ;;  %v623_v12 = vmul.f32 50.0, %v1432_v18  ;;  %v689_v26 = vsub.f32 %v619_v8, %v199_v52  ;;  %v1099_v24 = vadd.f32 %v1098_v7, %v1097_v15  ;;  %v206_v8 = vld [vmem:[%s2483_s1 + $0x218] sm:$0xff] }
  0xa9   :  { %v1045_v9 = vadd.f32 %v1044_v31, %v751_v47  ;;  %v627_v35 = vmul.f32 50.0, %v1434_v40  ;;  %v688_v28 = vsub.f32 %v618_v59, %v198_v21  ;;  %v691_v58 = vsub.f32 %v621_v60, %v201_v49 }
  0xaa   :  { %v1102_v39 = vsel %vm67_vm0, %v2388_v6, 0.0  ;;  %v1440_v56 = vpop.eup %1439  ;;  %v625_v4 = vmul.f32 50.0, %v1436_v46  ;;  %v757_v42 = vand.u32 2147483647, %v687_v36  ;;  %v1101_v48 = vadd.f32 %v1100_v5, %v1099_v24  ;;  %v202_v6 = vld [vmem:[%s2483_s1 + $0x1f8] sm:$0xff]  ;;  %s1468_s1 = smov [#allocation3]  }
  0xab   :  { %v1046_v63 = vadd.f32 %v1045_v9, %v753_v1  ;;  %v1442_v43 = vpop.eup %1441  ;;  %v622_v30 = vmul.f32 50.0, %v1430_v51  ;;  %v690_v3 = vsub.f32 %v620_v29, %v200_v32  ;;  %v756_v13 = vand.u32 2147483647, %v686_v25  ;;  %s1141_s4 = sshll.u32 %s1468_s1, 4  ;;  %s1142_s4 = int_to_ptr.vmem [resolvable:$true] %s1141_s4 }
  0xac   :  { %v1104_v10 = vsel %vm67_vm0, %v750_v55, 0.0  ;;  %v693_v19 = vsub.f32 %v623_v12, %v203_v53  ;;  %v759_v41 = vand.u32 2147483647, %v689_v26  ;;  %v1103_v16 = vadd.f32 %v1102_v39, %v1101_v48  ;;  %s1443_s5 = scalar_lea.vmem %s1142_s4, 256  ;;  %p1448_p1 = scmp.lt.s32.totalorder %s1142_s4, %s1142_s4 }
  0xad   :  { %v1047_v45 = vadd.f32 %v1046_v63, %v755_v27  ;;  %v624_v14 = vmul.f32 50.0, %v1438_v57  ;;  %v697_v37 = vsub.f32 %v627_v35, %v207_v62  ;;  %v761_v20 = vand.u32 2147483647, %v691_v58  ;;  %p1444_p0 = scmp.ne.s32.totalorder %s1142_s4, %s1443_s5  ;;  %p1449_p2 = scmp.lt.s32.totalorder %s1443_s5, %s1443_s5 }
  0xae   :  { %v1106_v44 = vsel %vm67_vm0, %v752_v54, 0.0  ;;  %v628_v2 = vmul.f32 50.0, %v1442_v43  ;;  %v695_v51 = vsub.f32 %v625_v4, %v205_v11  ;;  %v1105_v34 = vadd.f32 %v1104_v10, %v1103_v16 }
  0xaf   :  { %v1048_v55 = vadd.f32 %v1047_v45, %v757_v42  ;;  %v626_v61 = vmul.f32 50.0, %v1440_v56  ;;  %v692_v22 = vsub.f32 %v622_v30, %v202_v6  ;;  %v758_v47 = vand.u32 2147483647, %v688_v28  ;;  %v1019_v42 = vld [vmem:[#allocation2 + $0x8] sm:$0xff]  ;;  %p1450_p3 = por %p1449_p2, %p1448_p1 }
  0xb0   :  { %v1108_v50 = vsel %vm67_vm0, %v754_v33, 0.0  ;;  %v763_v54 = vand.u32 2147483647, %v693_v19  ;;  %v806_v23 = vadd.s32 272, %v2538_v17  ;;  %v1107_v52 = vadd.f32 %v1106_v44, %v1105_v34 }
  0xb1   :  { %v1049_v18 = vadd.f32 %v1048_v55, %v759_v41  ;;  %v694_v59 = vsub.f32 %v624_v14, %v204_v0  ;;  %v760_v60 = vand.u32 2147483647, %v690_v3  ;;  %v767_v1 = vand.u32 2147483647, %v697_v37  ;;  %p1451_p4 = pnand %p1450_p3, %p1444_p0 }
  0xb2   :  { %v1110_v7 = vsel %vm67_vm0, %v756_v13, 0.0  ;;  %v698_v40 = vsub.f32 %v628_v2, %v208_v38  ;;  %v765_v21 = vand.u32 2147483647, %v695_v51  ;;  %v1109_v25 = vadd.f32 %v1108_v50, %v1107_v52 }
  0xb3   :  { %v1050_v49 = vadd.f32 %v1049_v18, %v761_v20  ;;  %v696_v36 = vsub.f32 %v626_v61, %v206_v8  ;;  %v762_v31 = vand.u32 2147483647, %v692_v22  ;;  %v1112_v15 = vsel %vm67_vm0, %v758_v47, 0.0 }
  0xb4   :  { %vm877_vm1 = vcmp.lt.s32.totalorder %v806_v23, 275  ;;  %v1111_v29 = vadd.f32 %v1110_v7, %v1109_v25  ;;  %v764_v33 = vand.u32 2147483647, %v694_v59  ;;  %v1114_v5 = vsel %vm67_vm0, %v760_v60, 0.0 }
  0xb5   :  { %v1051_v46 = vadd.f32 %v1050_v49, %v763_v54  ;;  %v1016_v27 = vsel %vm877_vm1, %v767_v1, 0.0  ;;  %v768_v57 = vand.u32 2147483647, %v698_v40  ;;  %v766_v26 = vand.u32 2147483647, %v696_v36 }
  0xb6   :  { %v1113_v12 = vadd.f32 %v1112_v15, %v1111_v29  ;;  %v1116_v9 = vsel %vm67_vm0, %v762_v31, 0.0  ;;  %v1118_v35 = vsel %vm67_vm0, %v764_v33, 0.0 }
  0xb7   :  { %v1052_v32 = vadd.f32 %v1051_v46, %v765_v21  ;;  %v1017_v28 = vsel %vm877_vm1, %v768_v57, 0.0  ;;  %v1120_v39 = vsel %vm67_vm0, %v766_v26, 0.0 }
  0xb8   :  { %v1115_v53 = vadd.f32 %v1114_v5, %v1113_v12  ;;  %v1122_v62 = vsel %vm67_vm0, %v1017_v28, 0.0 }
  0xb9   :  { %v1053_v24 = vadd.f32 %v1052_v32, %v1016_v27 }
  0xba   :  { %v1117_v58 = vadd.f32 %v1116_v9, %v1115_v53 }
  0xbb   :  { %1133 = vst [vmem:[#allocation3] sm:$0xff] %v1053_v24 }
  0xbc   :  { %v1119_v56 = vadd.f32 %v1118_v35, %v1117_v58 }
  0xbe   :  { %v1121_v4 = vadd.f32 %v1120_v39, %v1119_v56 }
  0xc0   :  { %v1123_v63 = vadd.f32 %v1122_v62, %v1121_v4 }
  0xc2   :  { %v1125_v48 = vadd.f32 %v1123_v63, %v1019_v42 }
  0xc4   :  { %1127 = vst.msk [vmem:[#allocation2 + $0x8] sm:$0xff] %vm67_vm0, %v1125_v48 }
  0xcb   :  { %v1132_v43 = vld [vmem:[#allocation2 + $0x8] sm:$0xff] }
  0xcc   :  { %1134 = vst.msk [vmem:[#allocation3 + $0x8] sm:$0xff] %vm67_vm0, %v1132_v43 }
  0xcd   :  { %1454 = shalt.err (!%p1451_p4)
}
  0xce   :  { %s1455_s8 = scalar_lea.hbm %s2484_s2, 256 }
  0xcf   :  { %p1456_p5 = scmp.ne.s32.totalorder %s2484_s2, %s1455_s8  ;;  %p1459_p6 = scmp.lt.u32.totalorder %s1455_s8, %s2484_s2 }
  0xd1   :  { %p1461_p7 = pnand %p1459_p6, %p1456_p5 }
  0xd3   :  { %1464 = shalt.err (!%p1461_p7)
}
  0xd4   :  { %1144 = dma.vmem_to_hbm [thread:$0]  %s1142_s4, 256, %s2484_s2, [#allocation4]  }
  0xd5   :  { %1465 = dma.done.wait [#allocation4], 256  }
  0xd6   :  { %1466 = vsyncadd [#allocation4], 4294967040 }
  0xd7   :  { %1148 = vsyncpa [#allocation4], 1 }

</bundles_post_ra>
